<compile_context>
chip_gen: v6e
topology: v6e:2x2x1
jax: 0.10.0
libtpu: 0.0.40
codegen_flags: <defaults>
</compile_context>

<pallas_src>
import functools

import jax
import jax.numpy as jnp
from jax import lax
from jax.experimental import pallas as pl
from jax.experimental.pallas import tpu as pltpu

LANE = 128
SUBLANE = 8
CHUNK_ROWS = 256                      # rows per inner reduction chunk (32 vregs f32)
DEFAULT_TILE_ROWS = 8192              # 4 MiB f32 per input block
VMEM_LIMIT_BYTES = 32 * 1024 * 1024   # raises v5e's 16 MiB default; default elsewhere


def _num_tensorcores():
    """Best-effort TensorCores-per-device (v4/v5p/v7x -> 2, v5e/v6e -> 1).

    A wrong answer is never incorrect, only slightly sub-optimal, so every
    probe is wrapped and the fallback is 1."""
    try:
        info = pltpu.get_tpu_info()
        for name in ("num_cores", "num_tensorcores", "tensorcore_count", "core_count"):
            n = getattr(info, name, None)
            if isinstance(n, int) and 1 <= n <= 8:
                return n
    except Exception:
        pass
    try:
        kind = jax.devices()[0].device_kind.lower()
        if "lite" not in kind and any(t in kind for t in ("v4", "v5p", "v7")):
            return 2
    except Exception:
        pass
    return 1


def _flatten_to_lanes(a):
    """Flatten to (rows, 128) with rows a multiple of 8. Pure reshape when
    numel % 1024 == 0; otherwise only a <1024-element zero tail is padded
    (identical zeros in input and target contribute 0 to both sums)."""
    flat = a.reshape(-1)
    rem = flat.shape[0] % (LANE * SUBLANE)
    if rem:
        flat = jnp.pad(flat, (0, LANE * SUBLANE - rem))
    return flat.reshape(-1, LANE)


def _content_loss_kernel(x_ref, t_ref, o_ref, acc_ref, *,
                         rows, tile_rows, chunk, inner, num_blocks, two_slots):
    if two_slots:
        c = pl.program_id(0)            # core / partial-result slot (parallel)
        i = pl.program_id(1)            # row-block step (reduction)
        last_i = pl.num_programs(1) - 1
    else:
        c = 0
        i = pl.program_id(0)
        last_i = pl.num_programs(0) - 1
    block = c * inner + i               # global row-block index

    @pl.when(i == 0)
    def _():
        acc_ref[...] = jnp.zeros_like(acc_ref)

    groups = chunk // SUBLANE

    def accumulate(d):
        # d: (chunk, 128) f32.  The reshape groups whole (8,128) vreg tiles, so
        # the axis-0 sum is plain VPU adds straight into the VMEM accumulator.
        a = jnp.abs(d)
        acc_ref[0] += jnp.sum((d * d).reshape(groups, SUBLANE, LANE), axis=0)
        acc_ref[1] += jnp.sum(a.reshape(groups, SUBLANE, LANE), axis=0)

    def load_diff(r0):
        return (x_ref[pl.ds(r0, chunk), :].astype(jnp.float32)
                - t_ref[pl.ds(r0, chunk), :].astype(jnp.float32))

    n_chunks = tile_rows // chunk

    # Fast path: every row of this block is in bounds -> zero masking work.
    @pl.when((block + 1) * tile_rows <= rows)
    def _():
        def body(j, carry):
            r0 = pl.multiple_of(j * chunk, chunk)
            accumulate(load_diff(r0))
            return carry
        lax.fori_loop(0, n_chunks, body, 0)

    # Boundary path: only the single ragged last block takes it (statically
    # removed when rows % tile_rows == 0).  Dummy steps (block >= num_blocks)
    # fall through both branches and do nothing.
    if rows % tile_rows != 0:
        @pl.when(((block + 1) * tile_rows > rows) & (block < num_blocks))
        def _():
            valid_rows = rows - block * tile_rows            # > 0 here
            row_iota = lax.broadcasted_iota(jnp.int32, (chunk, LANE), 0)
            n_valid_chunks = (valid_rows + chunk - 1) // chunk
            def body(j, carry):
                r0 = pl.multiple_of(j * chunk, chunk)
                # Mask BEFORE squaring: OOB VMEM garbage (even NaN/Inf) is zeroed.
                d = jnp.where(r0 + row_iota < valid_rows, load_diff(r0), 0.0)
                accumulate(d)
                return carry
            lax.fori_loop(0, n_valid_chunks, body, 0)

    @pl.when(i == last_i)
    def _():
        o_ref[0] = acc_ref[...]


def _scaled_mse_from_lanes(xf, tf, eps, tile_rows, num_slots):
    rows = xf.shape[0]                  # multiple of SUBLANE by construction

    # Row tile: multiple of 8, no larger than the array and (when big enough)
    # a multiple of the inner reduction chunk.
    tile_rows = max(SUBLANE, min(tile_rows - tile_rows % SUBLANE, rows))
    if tile_rows > CHUNK_ROWS:
        tile_rows -= tile_rows % CHUNK_ROWS
        chunk = CHUNK_ROWS
    else:
        chunk = tile_rows

    num_blocks = pl.cdiv(rows, tile_rows)

    if num_slots is None:
        num_slots = _num_tensorcores()
    num_slots = max(1, min(int(num_slots), 2))
    if num_blocks < 2:
        num_slots = 1                   # nothing to split across cores

    inner = pl.cdiv(num_blocks, num_slots)
    has_dummy = num_slots * inner > num_blocks

    kernel = functools.partial(
        _content_loss_kernel, rows=rows, tile_rows=tile_rows, chunk=chunk,
        inner=inner, num_blocks=num_blocks, two_slots=(num_slots > 1))

    if num_slots == 1:
        grid = (num_blocks,)
        in_map = lambda i: (i, 0)
        out_map = lambda i: (0, 0, 0, 0)
        dims = ("arbitrary",)
    else:
        grid = (num_slots, inner)
        if has_dummy:
            # The trailing dummy step of slot 1 aliases the previous block
            # index: Pallas keeps the resident buffer (no extra HBM traffic)
            # and the kernel skips its accumulate (block >= num_blocks).
            in_map = lambda c, i: (jnp.minimum(c * inner + i, num_blocks - 1), 0)
        else:
            in_map = lambda c, i: (c * inner + i, 0)
        out_map = lambda c, i: (c, 0, 0, 0)
        dims = ("parallel", "arbitrary")

    partials = pl.pallas_call(
        kernel,
        out_shape=jax.ShapeDtypeStruct((num_slots, 2, SUBLANE, LANE), jnp.float32),
        grid_spec=pltpu.PrefetchScalarGridSpec(
            num_scalar_prefetch=0,
            grid=grid,
            in_specs=[
                pl.BlockSpec((tile_rows, LANE), in_map),
                pl.BlockSpec((tile_rows, LANE), in_map),
            ],
            out_specs=pl.BlockSpec((1, 2, SUBLANE, LANE), out_map),
            scratch_shapes=[pltpu.VMEM((2, SUBLANE, LANE), jnp.float32)],
        ),
        compiler_params=pltpu.CompilerParams(
            dimension_semantics=dims,
            vmem_limit_bytes=VMEM_LIMIT_BYTES,
        ),
    )(xf, tf)

    # Tiny epilogue: one cross-lane reduce of the per-slot partial sums + eps.
    sums = jnp.sum(partials, axis=(0, 2, 3))    # (sum_sq, sum_abs)
    return sums[0] / (sums[1] + jnp.float32(eps))


def content_loss(x, target, eps=1e-8, *, tile_rows=DEFAULT_TILE_ROWS, num_slots=None):
    """One-shot ScaledMSE content loss. x/target: same shape, any float dtype
    (bf16 inputs halve HBM traffic; in-kernel accumulation is always f32)."""
    assert x.shape == target.shape, "input/target shape mismatch"
    return _scaled_mse_from_lanes(_flatten_to_lanes(x), _flatten_to_lanes(target),
                                  eps, tile_rows, num_slots)


def make_content_loss(target, eps=1e-8, *, tile_rows=DEFAULT_TILE_ROWS, num_slots=None):
    """ContentLoss module equivalent: captures `target` (registered buffer)
    once — its flatten/pad prep happens exactly once — and returns a jitted
    loss(input) closure."""
    tf = _flatten_to_lanes(target)
    shape = target.shape

    @jax.jit
    def loss(x):
        assert x.shape == shape, "input/target shape mismatch"
        return _scaled_mse_from_lanes(_flatten_to_lanes(x), tf, eps,
                                      tile_rows, num_slots)

    return loss


def content_loss_ref(x, target, eps=1e-8):
    diff = x.astype(jnp.float32) - target.astype(jnp.float32)
    return jnp.sum(diff ** 2) / (jnp.sum(jnp.abs(diff)) + eps)


if __name__ == "__main__":
    key = jax.random.PRNGKey(0)
    k1, k2, k3, k4 = jax.random.split(key, 4)

    # 1) Small NCHW case matching the module spec (single block, no masking).
    x = jax.random.normal(k1, (2, 4, 16, 16), dtype=jnp.float32)
    target = jax.random.normal(k2, (2, 4, 16, 16), dtype=jnp.float32)
    loss_fn = make_content_loss(target, eps=1e-8)
    loss = jax.block_until_ready(loss_fn(x))
    ref = content_loss_ref(x, target, eps=1e-8)
    assert jnp.allclose(loss, ref, rtol=1e-4, atol=1e-6), (loss, ref)

    # 2) Larger feature map: multi-block pipeline with a ragged last block.
    x2 = jax.random.normal(k3, (2, 64, 96, 96), dtype=jnp.float32)
    t2 = jax.random.normal(k4, (2, 64, 96, 96), dtype=jnp.float32)
    loss2 = jax.block_until_ready(content_loss(x2, t2, eps=1e-8))
    ref2 = content_loss_ref(x2, t2, eps=1e-8)
    assert jnp.allclose(loss2, ref2, rtol=1e-4, atol=1e-6), (loss2, ref2)

    # 3) Force the 2-slot (dual-TensorCore) path with an odd block count so the
    #    aliased dummy step + boundary masking are exercised on any chip
    #    (on a single-TC chip the "parallel" axis just runs sequentially).
    loss3 = jax.block_until_ready(
        content_loss(x2, t2, eps=1e-8, tile_rows=2048, num_slots=2))
    assert jnp.allclose(loss3, ref2, rtol=1e-4, atol=1e-6), (loss3, ref2)

    print("KERNEL_OK")
</pallas_src>

<mosaic_0001>
module attributes {stable_mosaic.version = 11 : i64} {
  func.func @_content_loss_kernel(%arg0: i32, %arg1: memref<16x128xf32, #tpu.memory_space<vmem>>, %arg2: memref<16x128xf32, #tpu.memory_space<vmem>>, %arg3: memref<1x2x8x128xf32, #tpu.memory_space<vmem>>, %arg4: memref<2x8x128xf32, #tpu.memory_space<vmem>>) attributes {dimension_semantics = [#tpu.dimension_semantics<arbitrary>], iteration_bounds = array<i64: 1>, scalar_prefetch = 0 : i64, scratch_operands = 1 : i64, tpu.core_type = #tpu.core_type<tc>, window_params = [{transform_indices = @transform_0, window_bounds = array<i64: 16, 128>}, {transform_indices = @transform_1, window_bounds = array<i64: 16, 128>}, {pipeline_mode = #tpu.pipeline_mode<synchronous>, transform_indices = @transform_2, window_bounds = array<i64: 1, 2, 8, 128>}]} {
    %c0_i32 = arith.constant 0 : i32
    %0 = arith.addi %c0_i32, %arg0 : i32
    %c0_i32_0 = arith.constant 0 : i32
    %1 = arith.cmpi eq, %arg0, %c0_i32_0 : i32
    %2 = arith.extui %1 : i1 to i32
    %c0_i32_1 = arith.constant 0 : i32
    %3 = arith.cmpi ne, %2, %c0_i32_1 : i32
    scf.if %3 {
      %cst = arith.constant 0.000000e+00 : f32
      %12 = vector.broadcast %cst : f32 to vector<2x8x128xf32>
      %c0 = arith.constant 0 : index
      %c0_6 = arith.constant 0 : index
      %c0_7 = arith.constant 0 : index
      %13 = vector.load %arg4[%c0, %c0_6, %c0_7] : memref<2x8x128xf32, #tpu.memory_space<vmem>>, vector<2x8x128xf32>
      tpu.vector_store %arg4[%c0, %c0_6, %c0_7], %12 {strides = array<i32>} : memref<2x8x128xf32, #tpu.memory_space<vmem>>, vector<2x8x128xf32>,
    } else {
    }
    %c1_i32 = arith.constant 1 : i32
    %4 = arith.addi %0, %c1_i32 : i32
    %c16_i32 = arith.constant 16 : i32
    %5 = arith.muli %4, %c16_i32 : i32
    %c16_i32_2 = arith.constant 16 : i32
    %6 = arith.cmpi sle, %5, %c16_i32_2 : i32
    %7 = arith.extui %6 : i1 to i32
    %c0_i32_3 = arith.constant 0 : i32
    %8 = arith.cmpi ne, %7, %c0_i32_3 : i32
    scf.if %8 {
      %c0_i32_6 = arith.constant 0 : i32
      %c16_i32_7 = arith.constant 16 : i32
      %12 = arith.muli %c0_i32_6, %c16_i32_7 : i32
      %13 = tpu.assume_multiple %12, 16 : i32
      %14 = arith.index_cast %13 : i32 to index
      %c0 = arith.constant 0 : index
      %15 = vector.load %arg1[%14, %c0] : memref<16x128xf32, #tpu.memory_space<vmem>>, vector<16x128xf32>
      %16 = arith.index_cast %13 : i32 to index
      %c0_8 = arith.constant 0 : index
      %17 = vector.load %arg2[%16, %c0_8] : memref<16x128xf32, #tpu.memory_space<vmem>>, vector<16x128xf32>
      %18 = arith.subf %15, %17 : vector<16x128xf32>
      %19 = math.absf %18 : vector<16x128xf32>
      %c0_9 = arith.constant 0 : index
      %c0_10 = arith.constant 0 : index
      %c0_11 = arith.constant 0 : index
      %20 = vector.load %arg4[%c0_9, %c0_10, %c0_11] : memref<2x8x128xf32, #tpu.memory_space<vmem>>, vector<1x8x128xf32>
      %21 = vector.shape_cast %20 : vector<1x8x128xf32> to vector<8x128xf32>
      %22 = arith.mulf %18, %18 : vector<16x128xf32>
      %23 = vector.shape_cast %22 : vector<16x128xf32> to vector<2x8x128xf32>
      %cst = arith.constant dense<0.000000e+00> : vector<8x128xf32>
      %24 = vector.multi_reduction <add>, %23, %cst [0] : vector<2x8x128xf32> to vector<8x128xf32>
      %25 = arith.addf %21, %24 : vector<8x128xf32>
      %c0_12 = arith.constant 0 : index
      %c0_13 = arith.constant 0 : index
      %c0_14 = arith.constant 0 : index
      %26 = vector.load %arg4[%c0_12, %c0_13, %c0_14] : memref<2x8x128xf32, #tpu.memory_space<vmem>>, vector<1x8x128xf32>
      %27 = vector.shape_cast %26 : vector<1x8x128xf32> to vector<8x128xf32>
      %28 = vector.shape_cast %25 : vector<8x128xf32> to vector<1x8x128xf32>
      tpu.vector_store %arg4[%c0_12, %c0_13, %c0_14], %28 {strides = array<i32>} : memref<2x8x128xf32, #tpu.memory_space<vmem>>, vector<1x8x128xf32>,
      %c1 = arith.constant 1 : index
      %c0_15 = arith.constant 0 : index
      %c0_16 = arith.constant 0 : index
      %29 = vector.load %arg4[%c1, %c0_15, %c0_16] : memref<2x8x128xf32, #tpu.memory_space<vmem>>, vector<1x8x128xf32>
      %30 = vector.shape_cast %29 : vector<1x8x128xf32> to vector<8x128xf32>
      %31 = vector.shape_cast %19 : vector<16x128xf32> to vector<2x8x128xf32>
      %cst_17 = arith.constant dense<0.000000e+00> : vector<8x128xf32>
      %32 = vector.multi_reduction <add>, %31, %cst_17 [0] : vector<2x8x128xf32> to vector<8x128xf32>
      %33 = arith.addf %30, %32 : vector<8x128xf32>
      %c1_18 = arith.constant 1 : index
      %c0_19 = arith.constant 0 : index
      %c0_20 = arith.constant 0 : index
      %34 = vector.load %arg4[%c1_18, %c0_19, %c0_20] : memref<2x8x128xf32, #tpu.memory_space<vmem>>, vector<1x8x128xf32>
      %35 = vector.shape_cast %34 : vector<1x8x128xf32> to vector<8x128xf32>
      %36 = vector.shape_cast %33 : vector<8x128xf32> to vector<1x8x128xf32>
      tpu.vector_store %arg4[%c1_18, %c0_19, %c0_20], %36 {strides = array<i32>} : memref<2x8x128xf32, #tpu.memory_space<vmem>>, vector<1x8x128xf32>,
      %c1_i32_21 = arith.constant 1 : i32
    } else {
    }
    %c0_i32_4 = arith.constant 0 : i32
    %9 = arith.cmpi eq, %arg0, %c0_i32_4 : i32
    %10 = arith.extui %9 : i1 to i32
    %c0_i32_5 = arith.constant 0 : i32
    %11 = arith.cmpi ne, %10, %c0_i32_5 : i32
    scf.if %11 {
      %c0 = arith.constant 0 : index
      %c0_6 = arith.constant 0 : index
      %c0_7 = arith.constant 0 : index
      %12 = vector.load %arg4[%c0, %c0_6, %c0_7] : memref<2x8x128xf32, #tpu.memory_space<vmem>>, vector<2x8x128xf32>
      %c0_8 = arith.constant 0 : index
      %c0_9 = arith.constant 0 : index
      %c0_10 = arith.constant 0 : index
      %c0_11 = arith.constant 0 : index
      %13 = vector.load %arg3[%c0_8, %c0_9, %c0_10, %c0_11] : memref<1x2x8x128xf32, #tpu.memory_space<vmem>>, vector<1x2x8x128xf32>
      %14 = vector.shape_cast %13 : vector<1x2x8x128xf32> to vector<2x8x128xf32>
      %15 = vector.shape_cast %12 : vector<2x8x128xf32> to vector<1x2x8x128xf32>
      tpu.vector_store %arg3[%c0_8, %c0_9, %c0_10, %c0_11], %15 {strides = array<i32>} : memref<1x2x8x128xf32, #tpu.memory_space<vmem>>, vector<1x2x8x128xf32>,
    } else {
    }
    return
  }
  func.func @transform_0(%arg0: i32) -> (i32, i32) {
    %c0_i32 = arith.constant 0 : i32
    %c0_i32_0 = arith.constant 0 : i32
    return %arg0, %c0_i32 : i32, i32
  }
  func.func @transform_1(%arg0: i32) -> (i32, i32) {
    %c0_i32 = arith.constant 0 : i32
    %c0_i32_0 = arith.constant 0 : i32
    return %arg0, %c0_i32 : i32, i32
  }
  func.func @transform_2(%arg0: i32) -> (i32, i32, i32, i32) {
    %c0_i32 = arith.constant 0 : i32
    %c0_i32_0 = arith.constant 0 : i32
    %c0_i32_1 = arith.constant 0 : i32
    %c0_i32_2 = arith.constant 0 : i32
    %c0_i32_3 = arith.constant 0 : i32
    return %c0_i32, %c0_i32_0, %c0_i32_1, %c0_i32_2 : i32, i32, i32, i32
  }
}

</mosaic_0001>

<bundles_post_ra>
// kernel: loss.1
= control target key start
LH: loop header
LB: loop body
LE: loop exit
PB: predicated region body
PF: predicated region fallthrough
CT: control target
= control target key end

     0   :  { %s86_s0 = inlined_call_operand.vmem [shape: f32[16,128], index: 0, kind: input, shape index: {}]   ;;  %s87_s1 = inlined_call_operand.vmem [shape: f32[16,128], index: 1, kind: input, shape index: {}]   ;;  %s88_s2 = inlined_call_operand.vmem [shape: f32[1,2,8,128], index: 2, kind: output, shape index: {}]  }
   0x1   :  { %v23_v0 = vld [vmem:[%s86_s0] sm:$0xff]  ;;  %v24_v1 = vld [vmem:[%s86_s0 + $0x8] sm:$0xff] }
   0x2   :  { %v25_v2 = vld [vmem:[%s87_s1] sm:$0xff]  ;;  %v26_v3 = vld [vmem:[%s87_s1 + $0x8] sm:$0xff] }
   0x3   :  { %v27_v4 = vsub.f32 %v23_v0, %v25_v2  ;;  %v28_v5 = vsub.f32 %v24_v1, %v26_v3 }
   0x5   :  { %v32_v6 = vmul.f32 %v27_v4, %v27_v4  ;;  %v29_v7 = vand.u32 2147483647, %v27_v4  ;;  %v33_v8 = vmul.f32 %v28_v5, %v28_v5  ;;  %v30_v9 = vand.u32 2147483647, %v28_v5 }
   0x7   :  { %v34_v10 = vadd.f32 %v33_v8, %v32_v6  ;;  %v39_v11 = vadd.f32 %v30_v9, %v29_v7 }
   0x9   :  { %47 = vst [vmem:[%s88_s2] sm:$0xff] %v34_v10  ;;  %48 = vst [vmem:[%s88_s2 + $0x8] sm:$0xff] %v39_v11 }

</bundles_post_ra>
